<compile_context>
chip_gen: v7x
topology: tpu7x:2x2x1
jax: 0.10.0
libtpu: 0.0.40
codegen_flags: <defaults>
</compile_context>

<pallas_src>
import jax
import jax.numpy as jnp
from jax import lax
from jax.experimental import pallas as pl
from jax.experimental.pallas import tpu as pltpu

LANES = 128
ACC_SUBLANES = 8                  # f32 accumulator is one (8, 128) vreg
BLOCK_BYTES = 2 * 1024 * 1024     # ~2 MiB per input block (4096 f32 rows)
CHUNK_ROWS = 512                  # in-kernel chunk: ~1.5 MiB of f32 temporaries
NUM_SPLITS = 2                    # leading "parallel" axis (both TCs on v7x)


def _cdiv(a, b):
    return -(-a // b)


def _round_up(a, b):
    return _cdiv(a, b) * b


def _sublane_tile(dtype):
    # Native second-minor tile: 8 for 4-byte, 16 for 2-byte, 32 for 1-byte.
    return {4: 8, 2: 16, 1: 32}.get(jnp.dtype(dtype).itemsize, 8)


def _make_kernel(total_rows, block_rows, chunk_rows, need_mask):
    num_chunks = block_rows // chunk_rows
    folds = chunk_rows // ACC_SUBLANES

    def kernel(x_ref, y_ref, err_ref, self_ref):
        i = pl.program_id(1)

        @pl.when(i == 0)
        def _init():
            err_ref[...] = jnp.zeros_like(err_ref)
            self_ref[...] = jnp.zeros_like(self_ref)

        # Logical row offset of this grid step (used only for tail masking).
        block_row0 = (pl.program_id(0) * pl.num_programs(1) + i) * block_rows

        def fold(r0):
            xb = x_ref[pl.ds(r0, chunk_rows), :].astype(jnp.float32)
            yb = y_ref[pl.ds(r0, chunk_rows), :].astype(jnp.float32)
            if need_mask:
                rid = lax.broadcasted_iota(jnp.int32, (chunk_rows, LANES), 0)
                valid = (rid + block_row0 + r0) < total_rows
                xb = jnp.where(valid, xb, 0.0)
                yb = jnp.where(valid, yb, 0.0)
            d = xb - yb
            # Fold rows into (folds, 8, 128) vregs and add on the VPU; the
            # expensive cross-lane reduce is deferred to the wrapper.
            err_ref[...] += jnp.sum(
                (d * d).reshape(folds, ACC_SUBLANES, LANES), axis=0, keepdims=True)
            self_ref[...] += jnp.sum(
                (xb * xb).reshape(folds, ACC_SUBLANES, LANES), axis=0, keepdims=True)

        if num_chunks == 1:
            fold(0)
        else:
            @pl.loop(0, num_chunks)
            def _chunks(c):
                fold(pl.multiple_of(c * chunk_rows, chunk_rows))

    return kernel


def nrmse_loss(x: jax.Array, y: jax.Array) -> jax.Array:
    """NRMSE = ||x - y||_F / ||x||_F  (scalar, float32)."""
    assert x.shape == y.shape, "X and Y must have the same shape"
    total = x.size
    xf = x.reshape(-1)
    yf = y.reshape(-1)

    rows = total // LANES            # full 128-lane rows
    main = rows * LANES

    err_sum = jnp.float32(0.0)
    self_sum = jnp.float32(0.0)

    if rows > 0:
        sub = max(_sublane_tile(x.dtype), _sublane_tile(y.dtype))
        budget_rows = min(BLOCK_BYTES // (LANES * jnp.dtype(x.dtype).itemsize),
                          BLOCK_BYTES // (LANES * jnp.dtype(y.dtype).itemsize))
        budget_rows = max(sub, (budget_rows // sub) * sub)
        block_rows = min(budget_rows, _round_up(_cdiv(rows, NUM_SPLITS), sub))
        chunk_rows = min(block_rows, CHUNK_ROWS)
        block_rows = (block_rows // chunk_rows) * chunk_rows

        num_blocks = _cdiv(rows, block_rows)
        steps = _cdiv(num_blocks, NUM_SPLITS)
        need_mask = (NUM_SPLITS * steps * block_rows) != rows
        last_block = num_blocks - 1

        # Aligned-prefix slab; a free reshape when the size is lane-aligned.
        # TODO(synk): lane-ragged inputs pay one prefix-slice HBM copy here; a
        # fully zero-copy path would need 1-D element-masked blocks.
        x2d = (xf if main == total else xf[:main]).reshape(rows, LANES)
        y2d = (yf if main == total else yf[:main]).reshape(rows, LANES)

        def in_map(s, i):
            # Clamp so every DMA starts in-bounds; the kernel's row mask
            # zeroes any logically out-of-range (duplicated) block.
            return (jnp.minimum(s * steps + i, last_block), 0)

        def out_map(s, i):
            return (s, 0, 0)

        err_part, self_part = pl.pallas_call(
            _make_kernel(rows, block_rows, chunk_rows, need_mask),
            out_shape=(
                jax.ShapeDtypeStruct((NUM_SPLITS, ACC_SUBLANES, LANES), jnp.float32),
                jax.ShapeDtypeStruct((NUM_SPLITS, ACC_SUBLANES, LANES), jnp.float32),
            ),
            grid_spec=pltpu.PrefetchScalarGridSpec(
                num_scalar_prefetch=0,
                grid=(NUM_SPLITS, steps),
                in_specs=[
                    pl.BlockSpec((block_rows, LANES), in_map),
                    pl.BlockSpec((block_rows, LANES), in_map),
                ],
                out_specs=(
                    pl.BlockSpec((1, ACC_SUBLANES, LANES), out_map),
                    pl.BlockSpec((1, ACC_SUBLANES, LANES), out_map),
                ),
            ),
            compiler_params=pltpu.CompilerParams(
                dimension_semantics=("parallel", "arbitrary"),
            ),
        )(x2d, y2d)

        err_sum = err_sum + jnp.sum(err_part)
        self_sum = self_sum + jnp.sum(self_part)

    if main != total:
        # < 128-element lane tail: trivial plain-jnp sum, no padded copy.
        xt = xf[main:].astype(jnp.float32)
        yt = yf[main:].astype(jnp.float32)
        dt = xt - yt
        err_sum = err_sum + jnp.sum(dt * dt)
        self_sum = self_sum + jnp.sum(xt * xt)

    # Matches torch semantics: 0/0 -> nan, x/0 -> inf.
    return jnp.sqrt(err_sum) / jnp.sqrt(self_sum)


if __name__ == "__main__":
    key = jax.random.PRNGKey(0)
    kx, ky = jax.random.split(key)

    def ref_nrmse(X, Y):
        Xf = X.astype(jnp.float32).reshape(-1)
        Yf = Y.astype(jnp.float32).reshape(-1)
        return jnp.sqrt(jnp.sum((Xf - Yf) ** 2)) / jnp.sqrt(jnp.sum(Xf ** 2))

    # NCHW inputs, same as the PyTorch module would receive.
    X = jax.random.normal(kx, (2, 4, 16, 16), dtype=jnp.float32)
    Y = jax.random.normal(ky, (2, 4, 16, 16), dtype=jnp.float32)
    loss = nrmse_loss(X, Y)
    jax.block_until_ready(loss)
    assert jnp.allclose(loss, ref_nrmse(X, Y), rtol=1e-5, atol=1e-6), (
        loss, ref_nrmse(X, Y))

    # Lane-ragged shape: exercises masked partial block + jnp lane-tail path.
    Xr = jax.random.normal(kx, (3, 5, 7, 11), dtype=jnp.float32)
    Yr = jax.random.normal(ky, (3, 5, 7, 11), dtype=jnp.float32)
    loss_r = nrmse_loss(Xr, Yr)
    jax.block_until_ready(loss_r)
    assert jnp.allclose(loss_r, ref_nrmse(Xr, Yr), rtol=1e-5, atol=1e-6), (
        loss_r, ref_nrmse(Xr, Yr))

    # bf16 exercises the 16-sublane native tile + in-kernel f32 cast.
    Xb = jax.random.normal(kx, (2, 4, 16, 16), dtype=jnp.bfloat16)
    Yb = jax.random.normal(ky, (2, 4, 16, 16), dtype=jnp.bfloat16)
    loss_b = nrmse_loss(Xb, Yb)
    jax.block_until_ready(loss_b)
    assert jnp.allclose(loss_b, ref_nrmse(Xb, Yb), rtol=1e-4, atol=1e-5), (
        loss_b, ref_nrmse(Xb, Yb))

    print("KERNEL_OK")
</pallas_src>

<mosaic_0001>
module attributes {stable_mosaic.version = 11 : i64} {
  func.func @kernel(%arg0: i32, %arg1: i32, %arg2: memref<8x128xf32, #tpu.memory_space<vmem>>, %arg3: memref<8x128xf32, #tpu.memory_space<vmem>>, %arg4: memref<1x8x128xf32, #tpu.memory_space<vmem>>, %arg5: memref<1x8x128xf32, #tpu.memory_space<vmem>>) attributes {dimension_semantics = [#tpu.dimension_semantics<parallel>, #tpu.dimension_semantics<arbitrary>], iteration_bounds = array<i64: 2, 1>, scalar_prefetch = 0 : i64, scratch_operands = 0 : i64, tpu.core_type = #tpu.core_type<tc>, window_params = [{transform_indices = @transform_0, window_bounds = array<i64: 8, 128>}, {transform_indices = @transform_1, window_bounds = array<i64: 8, 128>}, {transform_indices = @transform_2, window_bounds = array<i64: 1, 8, 128>}, {transform_indices = @transform_3, window_bounds = array<i64: 1, 8, 128>}]} {
    %c0_i32 = arith.constant 0 : i32
    %0 = arith.cmpi eq, %arg1, %c0_i32 : i32
    %1 = arith.extui %0 : i1 to i32
    %c0_i32_0 = arith.constant 0 : i32
    %2 = arith.cmpi ne, %1, %c0_i32_0 : i32
    scf.if %2 {
      %cst_17 = arith.constant 0.000000e+00 : f32
      %20 = vector.broadcast %cst_17 : f32 to vector<1x8x128xf32>
      %c0_18 = arith.constant 0 : index
      %c0_19 = arith.constant 0 : index
      %c0_20 = arith.constant 0 : index
      %21 = vector.load %arg4[%c0_18, %c0_19, %c0_20] : memref<1x8x128xf32, #tpu.memory_space<vmem>>, vector<1x8x128xf32>
      tpu.vector_store %arg4[%c0_18, %c0_19, %c0_20], %20 {strides = array<i32>} : memref<1x8x128xf32, #tpu.memory_space<vmem>>, vector<1x8x128xf32>,
      %cst_21 = arith.constant 0.000000e+00 : f32
      %22 = vector.broadcast %cst_21 : f32 to vector<1x8x128xf32>
      %c0_22 = arith.constant 0 : index
      %c0_23 = arith.constant 0 : index
      %c0_24 = arith.constant 0 : index
      %23 = vector.load %arg5[%c0_22, %c0_23, %c0_24] : memref<1x8x128xf32, #tpu.memory_space<vmem>>, vector<1x8x128xf32>
      tpu.vector_store %arg5[%c0_22, %c0_23, %c0_24], %22 {strides = array<i32>} : memref<1x8x128xf32, #tpu.memory_space<vmem>>, vector<1x8x128xf32>,
    } else {
    }
    %c0 = arith.constant 0 : index
    %c0_1 = arith.constant 0 : index
    %3 = vector.load %arg2[%c0, %c0_1] : memref<8x128xf32, #tpu.memory_space<vmem>>, vector<8x128xf32>
    %c0_2 = arith.constant 0 : index
    %c0_3 = arith.constant 0 : index
    %4 = vector.load %arg3[%c0_2, %c0_3] : memref<8x128xf32, #tpu.memory_space<vmem>>, vector<8x128xf32>
    %5 = arith.subf %3, %4 : vector<8x128xf32>
    %c0_4 = arith.constant 0 : index
    %c0_5 = arith.constant 0 : index
    %c0_6 = arith.constant 0 : index
    %6 = vector.load %arg4[%c0_4, %c0_5, %c0_6] : memref<1x8x128xf32, #tpu.memory_space<vmem>>, vector<1x8x128xf32>
    %7 = arith.mulf %5, %5 : vector<8x128xf32>
    %8 = vector.shape_cast %7 : vector<8x128xf32> to vector<1x8x128xf32>
    %cst = arith.constant dense<0.000000e+00> : vector<8x128xf32>
    %9 = vector.multi_reduction <add>, %8, %cst [0] : vector<1x8x128xf32> to vector<8x128xf32>
    %10 = vector.shape_cast %9 : vector<8x128xf32> to vector<1x8x128xf32>
    %11 = arith.addf %6, %10 : vector<1x8x128xf32>
    %c0_7 = arith.constant 0 : index
    %c0_8 = arith.constant 0 : index
    %c0_9 = arith.constant 0 : index
    %12 = vector.load %arg4[%c0_7, %c0_8, %c0_9] : memref<1x8x128xf32, #tpu.memory_space<vmem>>, vector<1x8x128xf32>
    tpu.vector_store %arg4[%c0_7, %c0_8, %c0_9], %11 {strides = array<i32>} : memref<1x8x128xf32, #tpu.memory_space<vmem>>, vector<1x8x128xf32>,
    %c0_10 = arith.constant 0 : index
    %c0_11 = arith.constant 0 : index
    %c0_12 = arith.constant 0 : index
    %13 = vector.load %arg5[%c0_10, %c0_11, %c0_12] : memref<1x8x128xf32, #tpu.memory_space<vmem>>, vector<1x8x128xf32>
    %14 = arith.mulf %3, %3 : vector<8x128xf32>
    %15 = vector.shape_cast %14 : vector<8x128xf32> to vector<1x8x128xf32>
    %cst_13 = arith.constant dense<0.000000e+00> : vector<8x128xf32>
    %16 = vector.multi_reduction <add>, %15, %cst_13 [0] : vector<1x8x128xf32> to vector<8x128xf32>
    %17 = vector.shape_cast %16 : vector<8x128xf32> to vector<1x8x128xf32>
    %18 = arith.addf %13, %17 : vector<1x8x128xf32>
    %c0_14 = arith.constant 0 : index
    %c0_15 = arith.constant 0 : index
    %c0_16 = arith.constant 0 : index
    %19 = vector.load %arg5[%c0_14, %c0_15, %c0_16] : memref<1x8x128xf32, #tpu.memory_space<vmem>>, vector<1x8x128xf32>
    tpu.vector_store %arg5[%c0_14, %c0_15, %c0_16], %18 {strides = array<i32>} : memref<1x8x128xf32, #tpu.memory_space<vmem>>, vector<1x8x128xf32>,
    return
  }
  func.func @transform_0(%arg0: i32, %arg1: i32) -> (i32, i32) {
    %c1_i32 = arith.constant 1 : i32
    %0 = arith.muli %arg0, %c1_i32 : i32
    %1 = arith.addi %0, %arg1 : i32
    %c1_i32_0 = arith.constant 1 : i32
    %2 = arith.minsi %1, %c1_i32_0 : i32
    %c0_i32 = arith.constant 0 : i32
    %c0_i32_1 = arith.constant 0 : i32
    return %2, %c0_i32 : i32, i32
  }
  func.func @transform_1(%arg0: i32, %arg1: i32) -> (i32, i32) {
    %c1_i32 = arith.constant 1 : i32
    %0 = arith.muli %arg0, %c1_i32 : i32
    %1 = arith.addi %0, %arg1 : i32
    %c1_i32_0 = arith.constant 1 : i32
    %2 = arith.minsi %1, %c1_i32_0 : i32
    %c0_i32 = arith.constant 0 : i32
    %c0_i32_1 = arith.constant 0 : i32
    return %2, %c0_i32 : i32, i32
  }
  func.func @transform_2(%arg0: i32, %arg1: i32) -> (i32, i32, i32) {
    %c0_i32 = arith.constant 0 : i32
    %c0_i32_0 = arith.constant 0 : i32
    %c0_i32_1 = arith.constant 0 : i32
    return %arg0, %c0_i32, %c0_i32_0 : i32, i32, i32
  }
  func.func @transform_3(%arg0: i32, %arg1: i32) -> (i32, i32, i32) {
    %c0_i32 = arith.constant 0 : i32
    %c0_i32_0 = arith.constant 0 : i32
    %c0_i32_1 = arith.constant 0 : i32
    return %arg0, %c0_i32, %c0_i32_0 : i32, i32, i32
  }
}

</mosaic_0001>

<bundles_post_ra>
// kernel: tpu_custom_call.1
= control target key start
LH: loop header
LB: loop body
LE: loop exit
PB: predicated region body
PF: predicated region fallthrough
CT: control target
= control target key end

     0   :  { %s1086_s0 = inlined_call_operand.hbm [shape: f32[16,128], index: 0, kind: input, shape index: {}]   ;;  %s1087_s1 = inlined_call_operand.hbm [shape: f32[16,128], index: 1, kind: input, shape index: {}]   ;;  %s1088_s2 = inlined_call_operand.hbm [shape: f32[2,8,128], index: 2, kind: output, shape index: {0}]   ;;  %s1089_s3 = inlined_call_operand.hbm [shape: f32[2,8,128], index: 3, kind: output, shape index: {1}]  }
   0x1   :  { %1094 = sst [smem:[#allocation14_spill]] %s1086_s0 }
   0x2   :  { %9 = vsyncpa [#allocation3], 0 }
   0x3   :  { %11 = vsyncpa [#allocation3 + $0x1], 0 }
   0x4   :  { %12 = vsyncpa [#allocation6], 0 }
   0x5   :  { %14 = vsyncpa [#allocation6 + $0x1], 0 }
   0x6   :  { %15 = vsyncpa [#allocation4], 0 }
   0x7   :  { %17 = vsyncpa [#allocation4 + $0x1], 0 }
   0x8   :  { %18 = vsyncpa [#allocation9], 0 }
   0x9   :  { %20 = vsyncpa [#allocation9 + $0x1], 0  ;;  %s798_s12 = smov 0   ;;  %s800_s13 = smov 0  }
   0xa   :  { %s802_s14 = smov 0   ;;  %s804_s15 = smov 0  }
   0xb   :  { %s806_s16 = smov 0   ;;  %s808_s17 = smov 0  }
   0xc   :  { %s810_s18 = smov 0   ;;  %s812_s19 = smov 0  }
   0xd   :  { %s814_s20 = smov 0  }
   0xe LB: > { %s454_s21 = sadd.s32 4294967295, %s772_s20   ;;  %s455_s22 = sadd.s32 4294967294, %s772_s20   ;;  %s772_s20 = sphi %s814_s20, %s26_s20   ;;  %s768_s19 = sphi %s812_s19, %s1118_s19   ;;  %s764_s18 = sphi %s810_s18, %s1117_s18   ;;  %s760_s17 = sphi %s808_s17, %s1116_s17   ;;  %s756_s16 = sphi %s806_s16, %s1115_s16   ;;  %s752_s15 = sphi %s804_s15, %s1114_s15   ;;  %s748_s14 = sphi %s802_s14, %s1113_s14   ;;  %s744_s13 = sphi %s800_s13, %s1112_s13   ;;  %s740_s12 = sphi %s798_s12, %s1111_s12  }
   0xf   : > { %s38_s23 = sadd.s32 1, %s768_s19  ;;  %p43_p0 = scmp.lt.s32.totalorder %s768_s19, 1 }
  0x10   : > { %p40_p1 = scmp.ge.s32.totalorder %s38_s23, 2  ;;  %s51_s24 = sadd.s32 1, %s760_s17 }
  0x11   : > { %s847_s25 = scalar_select %p43_p0, %s768_s19, 1 }
  0x12   : > { %s1120_s23 = smov (%p40_p1, %s38_s23), 0  ;;  %p58_p2 = scmp.ne.s32.totalorder %s760_s17, %s756_s16 }
  0x13   : > { %p59_p3 = scmp.eq.s32.totalorder %s772_s20, 0  ;;  %p46_p4 = scmp.lt.s32.totalorder %s1120_s23, 1 }
  0x14   : > { %p64_p5 = scmp.ne.s32.totalorder %s756_s16, %s752_s15  ;;  %p65_p7 = scmp.eq.s32.totalorder %s454_s21, 0 }
  0x15   : > { %p856_p6 = por %p59_p3, %p58_p2  ;;  %s106_s29 = ssub.s32 %s768_s19, %s1120_s23 }
  0x16   : > { %s47_s27 = scalar_select %p46_p4, %s1120_s23, 1 }
  0x17   : > { %p861_p8 = por %p65_p7, %p64_p5  ;;  %p107_p9 = scmp.eq.s32.totalorder %s106_s29, 0 }
  0x18   : > { %s48_s30 = ssub.s32 %s847_s25, %s47_s27  ;;  %s109_s4 = sadd.s32 1, %s748_s14 }
  0x19   : > { %s1096_s28 = scalar_select %p861_p8, 1, 0 }
  0x1a   : > { %p49_p10 = scmp.eq.s32.totalorder %s48_s30, 0  ;;  %p119_p11 = scmp.ne.s32.totalorder %s748_s14, %s744_s13 }
  0x1b   : > { %s870_s5 = scalar_select %p107_p9, %s748_s14, %s109_s4  }
  0x1c   : > { %s873_s6 = scalar_select %p49_p10, %s760_s17, %s51_s24  }
  0x1d   : > { %p120_p12 = scmp.eq.s32.totalorder %s454_s21, 1  ;;  %p125_p13 = scmp.ne.s32.totalorder %s744_s13, %s740_s12 }
  0x1e   : > { %p126_p0 = scmp.eq.s32.totalorder %s455_s22, 1  ;;  %p495_p4 = scmp.lt.s32.totalorder %s772_s20, 2 }
  0x1f   : > { %p879_p1 = por %p120_p12, %p119_p11  ;;  %s890_s9 = sand.u32 1, %s760_s17  }
  0x20   : > { %p884_p3 = por %p126_p0, %p125_p13  ;;  %s1091_s10 = sshll.u32 %s847_s25, 7 }
  0x21   : > { %s1097_s7 = scalar_select %p879_p1, 1, 0 }
  0x22   : > { %s1098_s8 = scalar_select %p884_p3, 1, 0 }
  0x23   : > { %s1090_s11 = sshll.u32 %s890_s9, 3  ;;  %s1099_s0 = sld [smem:[#allocation14_spill]] }
  0x24   : > { %s176_s24 = scalar_lea.vmem [#allocation2], %s1090_s11  ;;  %p905_p5 = pnand %p495_p4, %p856_p6 }
  0x25   : > { %s186_s27 = sshll.u32 %s176_s24, 4  ;;  %s173_s30 = scalar_lea.sflag [#allocation3], %s890_s9  ;;  %s909_s27 = int_to_ptr.vmem [resolvable:$true] %s186_s27 }
  0x26   : > { %p572_p11 = pneg %p905_p5 }
  0x29   : > { %s899_s22 = scalar_lea.hbm %s1099_s0, %s1091_s10  ;;  %s575_s21 = scalar_lea.hbm %s1099_s0, 256 }
  0x2a   : > { %s570_s4 = scalar_lea.hbm %s899_s22, 128  ;;  %p576_p6 = scmp.lt.u32.totalorder %s899_s22, %s1099_s0 }
  0x2b   : > { %p571_p10 = scmp.ne.s32.totalorder %s899_s22, %s570_s4  ;;  %p577_p0 = scmp.lt.u32.totalorder %s575_s21, %s570_s4 }
  0x2c   : > { %p579_p2 = scmp.lt.u32.totalorder %s570_s4, %s899_s22 }
  0x2d   : > { %p573_p12 = pnand %p572_p11, %p571_p10  ;;  %p578_p4 = por %p577_p0, %p576_p6 }
  0x2f   : > { %p574_p13 = pneg %p573_p12  ;;  %p580_p7 = por %p579_p2, %p578_p4 }
  0x31   : > { %p581_p9 = pnand %p580_p7, %p574_p13 }
  0x33   : > { %584 = shalt.err (!%p581_p9)
}
  0x34   : > { %s585_s10 = scalar_lea.vmem %s909_s27, 128  ;;  %s774_s26 = smov [#allocation2]  }
  0x35   : > { %p586_p10 = scmp.ne.s32.totalorder %s909_s27, %s585_s10  ;;  %s590_s15 = sshll.u32 %s774_s26, 4  ;;  %s591_s15 = int_to_ptr.vmem [resolvable:$false] %s590_s15 }
  0x36   : > { %s592_s11 = scalar_lea.vmem %s591_s15, 256  ;;  %p593_p1 = scmp.lt.s32.totalorder %s909_s27, %s591_s15 }
  0x37   : > { %p588_p12 = pnand %p586_p10, %p572_p11  ;;  %p594_p6 = scmp.lt.s32.totalorder %s592_s11, %s585_s10 }
  0x39   : > { %p589_p3 = pneg %p588_p12  ;;  %p595_p0 = por %p594_p6, %p593_p1 }
  0x3b   : > { %p596_p2 = pnand %p595_p0, %p589_p3 }
  0x3d   : > { %599 = shalt.err (!%p596_p2)
}
  0x3e   : > { %484 = dma.hbm_to_vmem [thread:$0]  (!%p905_p5), %s899_s22, 128, %s909_s27, %s173_s30  }
  0x3f   : > { %p1101_p7 = scmp.lt.s32.totalorder %s772_s20, 3  ;;  %p1102_p9 = scmp.ge.s32.totalorder %s772_s20, 1 }
  0x40   : > { %s1104_s10 = sshll.u32 %s847_s25, 7  ;;  %s1105_s15 = sshll.u32 %s890_s9, 3 }
  0x41   : > { %p943_p13 = pnand %p1102_p9, %p1101_p7  ;;  %s952_s26 = scalar_lea.hbm %s1087_s1, %s1104_s10 }
  0x42   : > { %s197_s11 = scalar_lea.vmem [#allocation5], %s1105_s15  ;;  %s194_s22 = scalar_lea.sflag [#allocation6], %s890_s9 }
  0x43   : > { %s1103_s4 = scalar_select %p943_p13, 1, 0 }
  0x44   : > { %s207_s0 = sshll.u32 %s197_s11, 4  ;;  %s600_s27 = scalar_lea.hbm %s952_s26, 128  ;;  %s208_s0 = int_to_ptr.vmem [resolvable:$true] %s207_s0 }
  0x45   : > { %p601_p1 = scmp.ne.s32.totalorder %s952_s26, %s600_s27  ;;  %s605_s10 = scalar_lea.hbm %s1087_s1, 256 }
  0x46   : > { %p606_p10 = scmp.lt.u32.totalorder %s952_s26, %s1087_s1  ;;  %p607_p12 = scmp.lt.u32.totalorder %s605_s10, %s600_s27 }
  0x47   : > { %p603_p3 = pnand %p601_p1, %p572_p11  ;;  %p609_p0 = scmp.lt.u32.totalorder %s600_s27, %s952_s26 }
  0x48   : > { %p608_p6 = por %p607_p12, %p606_p10 }
  0x49   : > { %p604_p4 = pneg %p603_p3 }
  0x4a   : > { %p610_p2 = por %p609_p0, %p608_p6 }
  0x4c   : > { %p611_p7 = pnand %p610_p2, %p604_p4 }
  0x4e   : > { %614 = shalt.err (!%p611_p7)
}
  0x4f   : > { %s615_s9 = scalar_lea.vmem %s208_s0, 128  ;;  %s775_s15 = smov [#allocation5]  }
  0x50   : > { %p616_p9 = scmp.ne.s32.totalorder %s208_s0, %s615_s9  ;;  %s620_s11 = sshll.u32 %s775_s15, 4  ;;  %s621_s11 = int_to_ptr.vmem [resolvable:$false] %s620_s11 }
  0x51   : > { %s622_s25 = scalar_lea.vmem %s621_s11, 256  ;;  %p623_p8 = scmp.lt.s32.totalorder %s208_s0, %s621_s11 }
  0x52   : > { %p618_p1 = pnand %p616_p9, %p572_p11  ;;  %p624_p13 = scmp.lt.s32.totalorder %s622_s25, %s615_s9 }
  0x54   : > { %p619_p3 = pneg %p618_p1  ;;  %p625_p10 = por %p624_p13, %p623_p8 }
  0x56   : > { %p626_p12 = pnand %p625_p10, %p619_p3 }
  0x58   : > { %629 = shalt.err (!%p626_p12)
}
  0x59   : > { %487 = dma.hbm_to_vmem [thread:$0]  (!%p905_p5), %s952_s26, 128, %s208_s0, %s194_s22  }
  0x5a   : > { %p1106_p4 = scmp.ne.s32.totalorder %s1103_s4, 0 }
  0x5b   : > { %s218_s27 = sand.u32 (!%p1106_p4), 1, %s756_s16   ;;  %p1107_p11 = scmp.ne.s32.totalorder (!%p1106_p4), %s1096_s28, 0 }
  0x5c   : > { %216 = sbr.rel (%p1106_p4) target bundleno = 153 (0x99), region = 28  ;;  %s463_s30 = sshll.u32 (!%p1106_p4), %s218_s27, 3 }
  0x5d   : > { %s219_s10 = scalar_lea.sflag (!%p1106_p4), [#allocation3], %s218_s27  ;;  %s222_s21 = scalar_lea.vmem (!%p1106_p4), [#allocation2], %s463_s30 }
  0x63   : > { %723 = dma.done.wait (%p1107_p11), %s219_s10, 128  }
  0x64   : > { %725 = vsyncadd (%p1107_p11), %s219_s10, 4294967168  ;;  %s228_s24 = scalar_lea.sflag [#allocation6], %s218_s27  ;;  %s231_s9 = scalar_lea.vmem [#allocation5], %s463_s30 }
  0x65   : > { %727 = dma.done.wait (%p1107_p11), %s228_s24, 128  }
  0x66   : > { %729 = vsyncadd (%p1107_p11), %s228_s24, 4294967168  ;;  %s988_s0 = sand.u32 1, %s744_s13   ;;  %v276_v0 = vld [vmem:[%s222_s21] sm:$0xff]  ;;  %v277_v1 = vld [vmem:[%s231_s9] sm:$0xff]  ;;  %s469_s4 = sshll.u32 %s764_s18, 7 }
  0x67   : > { %s465_s29 = sshll.u32 %s988_s0, 3  ;;  %v278_v2 = vsub.f32 %v276_v0, %v277_v1  ;;  %v285_v3 = vmul.f32 %v276_v0, %v276_v0  ;;  %s998_s27 = scalar_lea.hbm %s1089_s3, %s469_s4 }
  0x68   : > { %s263_s26 = scalar_lea.vmem [#allocation8], %s465_s29  ;;  %s992_s15 = scalar_lea.vmem [#allocation7], %s465_s29 }
  0x69   : > { %s321_s22 = sshll.u32 %s263_s26, 4  ;;  %s308_s28 = sshll.u32 %s992_s15, 4  ;;  %v280_v4 = vmul.f32 %v278_v2, %v278_v2  ;;  %288 = vst [vmem:[%s263_s26] sm:$0xff] %v285_v3  ;;  %s1000_s22 = int_to_ptr.vmem [resolvable:$true] %s321_s22  ;;  %s1007_s28 = int_to_ptr.vmem [resolvable:$true] %s308_s28 }
  0x6a   : > { %s1005_s10 = scalar_lea.hbm %s1088_s2, %s469_s4  ;;  %s295_s21 = scalar_lea.sflag [#allocation9], %s988_s0 }
  0x6b   : > { %s630_s24 = scalar_lea.vmem %s1000_s22, 128  ;;  %p1108_p5 = scmp.ne.s32.totalorder %s1097_s7, 0 }
  0x6c   : > { %p631_p8 = scmp.ne.s32.totalorder %s1000_s22, %s630_s24  ;;  %s776_s9 = smov [#allocation8]  }
  0x6d   : > { %s634_s29 = sshll.u32 %s776_s9, 4  ;;  %s635_s29 = int_to_ptr.vmem [resolvable:$false] %s634_s29 }
  0x6e   : > { %p632_p13 = pnand %p631_p8, %p1108_p5  ;;  %s636_s11 = scalar_lea.vmem %s635_s29, 256 }
  0x6f   : > { %p637_p0 = scmp.lt.s32.totalorder %s1000_s22, %s635_s29  ;;  %p638_p2 = scmp.lt.s32.totalorder %s636_s11, %s630_s24 }
  0x70   : > { %p633_p6 = pneg %p632_p13 }
  0x71   : > { %p639_p7 = por %p638_p2, %p637_p0 }
  0x73   : > { %p640_p9 = pnand %p639_p7, %p633_p6 }
  0x75   : > { %643 = shalt.err (!%p640_p9)
}
  0x76   : > { %s644_s4 = scalar_lea.hbm %s998_s27, 128  ;;  %s648_s18 = scalar_lea.hbm %s1089_s3, 256 }
  0x77   : > { %p645_p1 = scmp.ne.s32.totalorder %s998_s27, %s644_s4  ;;  %p649_p12 = scmp.lt.u32.totalorder %s998_s27, %s1089_s3 }
  0x78   : > { %p650_p4 = scmp.lt.u32.totalorder %s648_s18, %s644_s4  ;;  %p652_p8 = scmp.lt.u32.totalorder %s644_s4, %s998_s27 }
  0x79   : > { %p646_p3 = pnand %p645_p1, %p1108_p5 }
  0x7a   : > { %p651_p11 = por %p650_p4, %p649_p12 }
  0x7b   : > { %p647_p10 = pneg %p646_p3 }
  0x7c   : > { %p653_p13 = por %p652_p8, %p651_p11 }
  0x7e   : > { %p654_p6 = pnand %p653_p13, %p647_p10 }
  0x80   : > { %657 = shalt.err (!%p654_p6)
}
  0x81   : > { %478 = dma.vmem_to_hbm [thread:$0]  (%p1108_p5), %s1000_s22, 128, %s998_s27, %s295_s21   ;;  %283 = vst [vmem:[%s992_s15] sm:$0xff] %v280_v4 }
  0x82   : > { %s290_s24 = scalar_lea.sflag [#allocation4], %s988_s0  ;;  %s658_s29 = scalar_lea.vmem %s1007_s28, 128 }
  0x83   : > { %p659_p0 = scmp.ne.s32.totalorder %s1007_s28, %s658_s29  ;;  %s777_s11 = smov [#allocation7]  }
  0x84   : > { %s662_s4 = sshll.u32 %s777_s11, 4  ;;  %s663_s4 = int_to_ptr.vmem [resolvable:$false] %s662_s4 }
  0x85   : > { %p660_p2 = pnand %p659_p0, %p1108_p5  ;;  %s664_s26 = scalar_lea.vmem %s663_s4, 256 }
  0x86   : > { %p665_p9 = scmp.lt.s32.totalorder %s1007_s28, %s663_s4  ;;  %p666_p1 = scmp.lt.s32.totalorder %s664_s26, %s658_s29 }
  0x87   : > { %p661_p7 = pneg %p660_p2 }
  0x88   : > { %p667_p3 = por %p666_p1, %p665_p9 }
  0x8a   : > { %p668_p10 = pnand %p667_p3, %p661_p7 }
  0x8c   : > { %671 = shalt.err (!%p668_p10)
}
  0x8d   : > { %s672_s0 = scalar_lea.hbm %s1005_s10, 128  ;;  %s676_s27 = scalar_lea.hbm %s1088_s2, 256 }
  0x8e   : > { %p673_p12 = scmp.ne.s32.totalorder %s1005_s10, %s672_s0  ;;  %p677_p8 = scmp.lt.u32.totalorder %s1005_s10, %s1088_s2 }
  0x8f   : > { %p678_p13 = scmp.lt.u32.totalorder %s676_s27, %s672_s0  ;;  %p680_p0 = scmp.lt.u32.totalorder %s672_s0, %s1005_s10 }
  0x90   : > { %p674_p4 = pnand %p673_p12, %p1108_p5 }
  0x91   : > { %p679_p6 = por %p678_p13, %p677_p8 }
  0x92   : > { %p675_p11 = pneg %p674_p4 }
  0x93   : > { %p681_p2 = por %p680_p0, %p679_p6 }
  0x95   : > { %p682_p7 = pnand %p681_p2, %p675_p11 }
  0x97   : > { %685 = shalt.err (!%p682_p7)
}
  0x98   : > { %477 = dma.vmem_to_hbm [thread:$0]  (%p1108_p5), %s1007_s28, 128, %s1005_s10, %s290_s24  }
  0x99 PF: > { %s333_s18 = sand.u32 1, %s740_s12   ;;  %p1109_p9 = scmp.ne.s32.totalorder %s1098_s8, 0 }
  0x9a   : > { %p1110_p1 = scmp.ge.s32.totalorder %s772_s20, 2  ;;  %s334_s30 = scalar_lea.sflag [#allocation4], %s333_s18 }
  0x9c   : > { %p489_p3 = pnand %p1110_p1, %p1109_p9 }
  0x9e   : > { %731 = dma.done.wait (!%p489_p3), %s334_s30, 128  }
  0x9f   : > { %733 = vsyncadd (!%p489_p3), %s334_s30, 4294967168  ;;  %s343_s9 = scalar_lea.sflag [#allocation9], %s333_s18 }
  0xa0   : > { %735 = dma.done.wait (!%p489_p3), %s343_s9, 128  }
  0xa1   : > { %737 = vsyncadd (!%p489_p3), %s343_s9, 4294967168  ;;  %s26_s20 = sadd.s32 1, %s772_s20   ;;  %s1111_s12 = smov %s744_s13 }
  0xa2   : > { %p23_p10 = scmp.ge.s32.totalorder %s26_s20, 4   ;;  %s1112_s13 = smov %s748_s14 }
  0xa3   : > { %s1113_s14 = smov %s870_s5  ;;  %s1114_s15 = smov %s756_s16 }
  0xa4   : > { %s1115_s16 = smov %s760_s17  ;;  %s1116_s17 = smov %s873_s6 }
  0xa5   : > { %s1117_s18 = smov %s768_s19  ;;  %s1118_s19 = smov %s1120_s23 }
  0xa6   :  { %25 = sbr.rel (!%p23_p10) target bundleno = 14 (0xe), region = 107 }
  0xad   :  { %348 = vsyncpa [#allocation3], 1 }
  0xae   :  { %350 = vsyncpa [#allocation3 + $0x1], 1 }
  0xaf   :  { %351 = vsyncpa [#allocation6], 1 }
  0xb0   :  { %353 = vsyncpa [#allocation6 + $0x1], 1 }
  0xb1   :  { %354 = vsyncpa [#allocation4], 1 }
  0xb2   :  { %356 = vsyncpa [#allocation4 + $0x1], 1 }
  0xb3   :  { %357 = vsyncpa [#allocation9], 1 }
  0xb4   :  { %359 = vsyncpa [#allocation9 + $0x1], 1 }

</bundles_post_ra>
